<compile_context>
chip_gen: v5e
topology: v5e:2x2
jax: 0.10.0
libtpu: 0.0.40
codegen_flags: <defaults>
</compile_context>

<pallas_src>
import functools

import jax
import jax.numpy as jnp
from jax.experimental import pallas as pl
from jax.experimental.pallas import tpu as pltpu


NEG_SLOPE = 0.01       # F.leaky_relu default
NUM_CLASSES = 2
LANE = 128


def _leaky_relu(v):
    return jnp.where(v >= 0, v, NEG_SLOPE * v)


def _round_up(n, m):
    return ((n + m - 1) // m) * m


def mlp_kernel(x_ref, blast_ref, w1a_ref, w1b_ref, b1_ref,
               w2_ref, b2_ref, w3_ref, b3_ref, w4_ref, b4_ref,
               o_ref, acc_ref):
    """Fused forward for one (batch-tile, layer-1 K-tile) grid step.

    grid = (batch tiles [parallel], layer-1 K tiles [arbitrary])
    x_ref:     (TB, TK)    bf16 flattened-image K tile
    blast_ref: (TB, 2)     f32
    w1a_ref:   (TK, H1)    bf16 streamed layer-1 weight K tile
    w1b_ref:   (2,  H1)    f32  blast rows of layer-1 weight (VPU path)
    wN_ref:    (inN, outN) bf16 pre-transposed, bN_ref (1, outN) f32
    o_ref:     (TB, 128)   f32 lane-dense softmax slab (first 2 lanes real)
    acc_ref:   (TB, H1)    f32 layer-1 accumulator scratch
    """
    k = pl.program_id(1)
    nk = pl.num_programs(1)

    @pl.when(k == 0)
    def _init():
        # bias + blast contribution: K=2, so do it on the VPU, not the MXU
        blast = blast_ref[...]
        w1b = w1b_ref[...]
        acc_ref[...] = (b1_ref[...]
                        + blast[:, 0:1] * w1b[0:1, :]
                        + blast[:, 1:2] * w1b[1:2, :])

    # ffc1: accumulate this K tile on the MXU (bf16 operands, f32 accumulate)
    acc_ref[...] += jnp.dot(x_ref[...], w1a_ref[...],
                            preferred_element_type=jnp.float32)

    @pl.when(k == nk - 1)
    def _finalize():
        # dropout == identity in eval mode
        h = _leaky_relu(acc_ref[...])                                   # f32 VPU
        h = _leaky_relu(jnp.dot(h.astype(jnp.bfloat16), w2_ref[...],
                                preferred_element_type=jnp.float32) + b2_ref[...])
        h = _leaky_relu(jnp.dot(h.astype(jnp.bfloat16), w3_ref[...],
                                preferred_element_type=jnp.float32) + b3_ref[...])
        logits = jnp.dot(h.astype(jnp.bfloat16), w4_ref[...],
                         preferred_element_type=jnp.float32) + b4_ref[...]
        # only the first NUM_CLASSES lanes are real classes; mask pad lanes so
        # they don't enter the softmax normalization
        col = jax.lax.broadcasted_iota(jnp.int32, logits.shape, 1)
        logits = jnp.where(col < NUM_CLASSES, logits, -jnp.inf)
        m = jnp.max(logits, axis=1, keepdims=True)
        e = jnp.exp(logits - m)
        o_ref[...] = (e / jnp.sum(e, axis=1, keepdims=True)).astype(o_ref.dtype)


@functools.partial(jax.jit, static_argnames=("tile_b", "tile_k"))
def net_forward(x, blast, params, *, tile_b=None, tile_k=256):
    """x: [B, H, W] image-like input, blast: [B, 2] -> [B, 2] softmax probs."""
    B = x.shape[0]
    x_flat = x.reshape(B, -1).astype(jnp.bfloat16)   # MXU operand dtype
    blast = blast.astype(jnp.float32)
    d_flat = x_flat.shape[1]

    if tile_b is None:
        # full batch -> maximal MXU M utilization for small B
        # (on v7x with large batches prefer >=2 parallel tiles, e.g. tile_b=128)
        tile_b = B
    assert B % tile_b == 0, "batch must be divisible by tile_b"
    assert d_flat % tile_k == 0, "flattened width must be divisible by tile_k"

    (w1, b1), (w2, b2), (w3, b3), (w4, b4) = params
    H1, H2, H3, Dout = w1.shape[1], w2.shape[1], w3.shape[1], w4.shape[1]
    assert w1.shape[0] == d_flat + blast.shape[1]
    H3P = _round_up(H3, LANE)        # lane-align hidden-3 width
    DOUTP = _round_up(Dout, LANE)    # lane-dense output slab (no masked vst)

    # split layer-1 weight: image rows (streamed bf16 K tiles) / blast rows (f32)
    w1a = w1[:d_flat].astype(jnp.bfloat16)
    w1b = w1[d_flat:].astype(jnp.float32)
    b1f = b1.astype(jnp.float32)
    w2b = w2.astype(jnp.bfloat16)
    b2f = b2.astype(jnp.float32)
    # zero-pad H3 -> H3P and Dout -> DOUTP (pad logits are masked in-kernel)
    w3p = jnp.zeros((H2, H3P), jnp.float32).at[:, :H3].set(w3).astype(jnp.bfloat16)
    b3p = jnp.zeros((1, H3P), jnp.float32).at[:, :H3].set(b3)
    w4p = jnp.zeros((H3P, DOUTP), jnp.float32).at[:H3, :Dout].set(w4).astype(jnp.bfloat16)
    b4p = jnp.zeros((1, DOUTP), jnp.float32).at[:, :Dout].set(b4)

    grid = (B // tile_b, d_flat // tile_k)

    def rep(shape):                  # same full block at every grid step
        return pl.BlockSpec(shape, lambda i, k: (0,) * len(shape))

    out_full = pl.pallas_call(
        mlp_kernel,
        out_shape=jax.ShapeDtypeStruct((B, DOUTP), jnp.float32),
        grid=grid,
        in_specs=[
            pl.BlockSpec((tile_b, tile_k), lambda i, k: (i, k)),   # x K tiles
            pl.BlockSpec((tile_b, 2), lambda i, k: (i, 0)),        # blast
            # layer-1 weight streamed along K; at production scale (786k x 4096)
            # add pipeline_mode=pl.Buffered(3) here to deepen the weight pipeline
            pl.BlockSpec((tile_k, H1), lambda i, k: (k, 0)),
            rep((2, H1)), rep((1, H1)),
            rep((H1, H2)), rep((1, H2)),
            rep((H2, H3P)), rep((1, H3P)),
            rep((H3P, DOUTP)), rep((1, DOUTP)),
        ],
        out_specs=pl.BlockSpec((tile_b, DOUTP), lambda i, k: (i, 0)),
        scratch_shapes=[pltpu.VMEM((tile_b, H1), jnp.float32)],
        compiler_params=pltpu.CompilerParams(
            dimension_semantics=("parallel", "arbitrary"),
            vmem_limit_bytes=48 * 1024 * 1024),
    )(x_flat, blast, w1a, w1b, b1f, w2b, b2f, w3p, b3p, w4p, b4p)

    return out_full[:, :Dout]


def init_params(key, d_in, dims=(256, 128, 64, 2)):
    """PyTorch-style init U(-1/sqrt(fan_in), 1/sqrt(fan_in)).

    Weights stored pre-transposed as [in, out]; biases as [1, out].
    """
    params = []
    fan_in = d_in
    for d_out in dims:
        key, kw, kb = jax.random.split(key, 3)
        bound = 1.0 / (fan_in ** 0.5)
        w = jax.random.uniform(kw, (fan_in, d_out), jnp.float32, -bound, bound)
        b = jax.random.uniform(kb, (1, d_out), jnp.float32, -bound, bound)
        params.append((w, b))
        fan_in = d_out
    return params


def _reference_f32(x, blast, params):
    """Pure-JAX f32 reference of the PyTorch forward (eval mode)."""
    h = jnp.concatenate([x.reshape(x.shape[0], -1), blast], axis=1)
    (w1, b1), (w2, b2), (w3, b3), (w4, b4) = params
    h = _leaky_relu(h @ w1 + b1)
    h = _leaky_relu(h @ w2 + b2)
    h = _leaky_relu(h @ w3 + b3)
    return jax.nn.softmax(h @ w4 + b4, axis=1)


def _reference_bf16(x, blast, params):
    """Reference with the same matmul dtypes as the kernel (bf16 ops, f32 acc)."""
    xf = x.reshape(x.shape[0], -1)
    d = xf.shape[1]
    (w1, b1), (w2, b2), (w3, b3), (w4, b4) = params

    def mm(a, w):
        return jnp.dot(a.astype(jnp.bfloat16), w.astype(jnp.bfloat16),
                       preferred_element_type=jnp.float32)

    blast_term = blast[:, 0:1] * w1[d:d + 1] + blast[:, 1:2] * w1[d + 1:d + 2]
    h = _leaky_relu(mm(xf, w1[:d]) + blast_term + b1)
    h = _leaky_relu(mm(h, w2) + b2)
    h = _leaky_relu(mm(h, w3) + b3)
    return jax.nn.softmax(mm(h, w4) + b4, axis=1)


if __name__ == "__main__":
    key = jax.random.PRNGKey(0)
    k_x, k_b, k_p = jax.random.split(key, 3)

    B, H, W = 16, 32, 24          # flattened image = 768 features
    x = jax.random.normal(k_x, (B, H, W), jnp.float32)
    blast = jax.random.normal(k_b, (B, 2), jnp.float32)

    d_in = H * W + 2              # toy mirror of 1024*768 + 2
    params = init_params(k_p, d_in)

    out = net_forward(x, blast, params, tile_k=256)
    out = jax.block_until_ready(out)

    assert out.shape == (B, 2)
    assert bool(jnp.all(jnp.isfinite(out)))
    assert bool(jnp.allclose(jnp.sum(out, axis=1), 1.0, atol=1e-5))

    ref_matched = _reference_bf16(x, blast, params)
    assert bool(jnp.allclose(out, ref_matched, atol=2e-3)), \
        float(jnp.max(jnp.abs(out - ref_matched)))

    ref_f32 = _reference_f32(x, blast, params)
    assert bool(jnp.allclose(out, ref_f32, atol=5e-2)), \
        float(jnp.max(jnp.abs(out - ref_f32)))

    print("KERNEL_OK")
</pallas_src>

<mosaic_0001>
module attributes {stable_mosaic.version = 11 : i64} {
  func.func @mlp_kernel(%arg0: i32, %arg1: i32, %arg2: memref<16x256xbf16, #tpu.memory_space<vmem>>, %arg3: memref<16x2xf32, #tpu.memory_space<vmem>>, %arg4: memref<256x256xbf16, #tpu.memory_space<vmem>>, %arg5: memref<2x256xf32, #tpu.memory_space<vmem>>, %arg6: memref<1x256xf32, #tpu.memory_space<vmem>>, %arg7: memref<256x128xbf16, #tpu.memory_space<vmem>>, %arg8: memref<1x128xf32, #tpu.memory_space<vmem>>, %arg9: memref<128x128xbf16, #tpu.memory_space<vmem>>, %arg10: memref<1x128xf32, #tpu.memory_space<vmem>>, %arg11: memref<128x128xbf16, #tpu.memory_space<vmem>>, %arg12: memref<1x128xf32, #tpu.memory_space<vmem>>, %arg13: memref<16x128xf32, #tpu.memory_space<vmem>>, %arg14: memref<16x256xf32, #tpu.memory_space<vmem>>) attributes {dimension_semantics = [#tpu.dimension_semantics<parallel>, #tpu.dimension_semantics<arbitrary>], iteration_bounds = array<i64: 1, 3>, scalar_prefetch = 0 : i64, scratch_operands = 1 : i64, tpu.core_type = #tpu.core_type<tc>, window_params = [{transform_indices = @transform_0, window_bounds = array<i64: 16, 256>}, {transform_indices = @transform_1, window_bounds = array<i64: 16, 2>}, {transform_indices = @transform_2, window_bounds = array<i64: 256, 256>}, {pipeline_mode = #tpu.pipeline_mode<synchronous>, transform_indices = @transform_3, window_bounds = array<i64: 2, 256>}, {pipeline_mode = #tpu.pipeline_mode<synchronous>, transform_indices = @transform_4, window_bounds = array<i64: 1, 256>}, {pipeline_mode = #tpu.pipeline_mode<synchronous>, transform_indices = @transform_5, window_bounds = array<i64: 256, 128>}, {pipeline_mode = #tpu.pipeline_mode<synchronous>, transform_indices = @transform_6, window_bounds = array<i64: 1, 128>}, {pipeline_mode = #tpu.pipeline_mode<synchronous>, transform_indices = @transform_7, window_bounds = array<i64: 128, 128>}, {pipeline_mode = #tpu.pipeline_mode<synchronous>, transform_indices = @transform_8, window_bounds = array<i64: 1, 128>}, {pipeline_mode = #tpu.pipeline_mode<synchronous>, transform_indices = @transform_9, window_bounds = array<i64: 128, 128>}, {pipeline_mode = #tpu.pipeline_mode<synchronous>, transform_indices = @transform_10, window_bounds = array<i64: 1, 128>}, {transform_indices = @transform_11, window_bounds = array<i64: 16, 128>}]} {
    %c0_i32 = arith.constant 0 : i32
    %0 = arith.cmpi eq, %arg1, %c0_i32 : i32
    %1 = arith.extui %0 : i1 to i32
    %c0_i32_0 = arith.constant 0 : i32
    %2 = arith.cmpi ne, %1, %c0_i32_0 : i32
    scf.if %2 {
      %c0_9 = arith.constant 0 : index
      %c0_10 = arith.constant 0 : index
      %12 = vector.load %arg3[%c0_9, %c0_10] : memref<16x2xf32, #tpu.memory_space<vmem>>, vector<16x2xf32>
      %c0_11 = arith.constant 0 : index
      %c0_12 = arith.constant 0 : index
      %13 = vector.load %arg5[%c0_11, %c0_12] : memref<2x256xf32, #tpu.memory_space<vmem>>, vector<2x256xf32>
      %c0_13 = arith.constant 0 : index
      %c0_14 = arith.constant 0 : index
      %14 = vector.load %arg6[%c0_13, %c0_14] : memref<1x256xf32, #tpu.memory_space<vmem>>, vector<1x256xf32>
      %15 = vector.extract_strided_slice %12 {offsets = [0, 0], sizes = [16, 1], strides = [1, 1]} : vector<16x2xf32> to vector<16x1xf32>
      %16 = vector.extract_strided_slice %13 {offsets = [0, 0], sizes = [1, 256], strides = [1, 1]} : vector<2x256xf32> to vector<1x256xf32>
      %17 = vector.broadcast %15 : vector<16x1xf32> to vector<16x256xf32>
      %18 = vector.broadcast %16 : vector<1x256xf32> to vector<16x256xf32>
      %19 = arith.mulf %17, %18 : vector<16x256xf32>
      %20 = vector.broadcast %14 : vector<1x256xf32> to vector<16x256xf32>
      %21 = arith.addf %20, %19 : vector<16x256xf32>
      %22 = vector.extract_strided_slice %12 {offsets = [0, 1], sizes = [16, 1], strides = [1, 1]} : vector<16x2xf32> to vector<16x1xf32>
      %23 = vector.extract_strided_slice %13 {offsets = [1, 0], sizes = [1, 256], strides = [1, 1]} : vector<2x256xf32> to vector<1x256xf32>
      %24 = vector.broadcast %22 : vector<16x1xf32> to vector<16x256xf32>
      %25 = vector.broadcast %23 : vector<1x256xf32> to vector<16x256xf32>
      %26 = arith.mulf %24, %25 : vector<16x256xf32>
      %27 = arith.addf %21, %26 : vector<16x256xf32>
      %c0_15 = arith.constant 0 : index
      %c0_16 = arith.constant 0 : index
      %28 = vector.load %arg14[%c0_15, %c0_16] : memref<16x256xf32, #tpu.memory_space<vmem>>, vector<16x256xf32>
      tpu.vector_store %arg14[%c0_15, %c0_16], %27 {strides = array<i32>} : memref<16x256xf32, #tpu.memory_space<vmem>>, vector<16x256xf32>,
    } else {
    }
    %c0 = arith.constant 0 : index
    %c0_1 = arith.constant 0 : index
    %3 = vector.load %arg14[%c0, %c0_1] : memref<16x256xf32, #tpu.memory_space<vmem>>, vector<16x256xf32>
    %c0_2 = arith.constant 0 : index
    %c0_3 = arith.constant 0 : index
    %4 = vector.load %arg2[%c0_2, %c0_3] : memref<16x256xbf16, #tpu.memory_space<vmem>>, vector<16x256xbf16>
    %c0_4 = arith.constant 0 : index
    %c0_5 = arith.constant 0 : index
    %5 = vector.load %arg4[%c0_4, %c0_5] : memref<256x256xbf16, #tpu.memory_space<vmem>>, vector<256x256xbf16>
    %cst = arith.constant dense<0.000000e+00> : vector<16x256xf32>
    %6 = tpu.matmul %4, %5, %cst {dimension_numbers = #tpu.dot_dimension_numbers<[1], [0], [0], [1], [0, 0, 1, 1], [], []>} : vector<16x256xbf16>, vector<256x256xbf16>, vector<16x256xf32> -> vector<16x256xf32>
    %7 = arith.addf %3, %6 : vector<16x256xf32>
    %c0_6 = arith.constant 0 : index
    %c0_7 = arith.constant 0 : index
    %8 = vector.load %arg14[%c0_6, %c0_7] : memref<16x256xf32, #tpu.memory_space<vmem>>, vector<16x256xf32>
    tpu.vector_store %arg14[%c0_6, %c0_7], %7 {strides = array<i32>} : memref<16x256xf32, #tpu.memory_space<vmem>>, vector<16x256xf32>,
    %c2_i32 = arith.constant 2 : i32
    %9 = arith.cmpi eq, %arg1, %c2_i32 : i32
    %10 = arith.extui %9 : i1 to i32
    %c0_i32_8 = arith.constant 0 : i32
    %11 = arith.cmpi ne, %10, %c0_i32_8 : i32
    scf.if %11 {
      %c0_9 = arith.constant 0 : index
      %c0_10 = arith.constant 0 : index
      %12 = vector.load %arg14[%c0_9, %c0_10] : memref<16x256xf32, #tpu.memory_space<vmem>>, vector<16x256xf32>
      %cst_11 = arith.constant 0.000000e+00 : f32
      %13 = vector.broadcast %cst_11 : f32 to vector<16x256xf32>
      %14 = arith.cmpf oge, %12, %13 : vector<16x256xf32>
      %cst_12 = arith.constant 0.00999999977 : f32
      %15 = vector.broadcast %cst_12 : f32 to vector<16x256xf32>
      %16 = arith.mulf %15, %12 : vector<16x256xf32>
      %17 = arith.select %14, %12, %16 : vector<16x256xi1>, vector<16x256xf32>
      %18 = arith.truncf %17 : vector<16x256xf32> to vector<16x256xbf16>
      %c0_13 = arith.constant 0 : index
      %c0_14 = arith.constant 0 : index
      %19 = vector.load %arg7[%c0_13, %c0_14] : memref<256x128xbf16, #tpu.memory_space<vmem>>, vector<256x128xbf16>
      %cst_15 = arith.constant dense<0.000000e+00> : vector<16x128xf32>
      %20 = tpu.matmul %18, %19, %cst_15 {dimension_numbers = #tpu.dot_dimension_numbers<[1], [0], [0], [1], [0, 0, 1, 1], [], []>} : vector<16x256xbf16>, vector<256x128xbf16>, vector<16x128xf32> -> vector<16x128xf32>
      %c0_16 = arith.constant 0 : index
      %c0_17 = arith.constant 0 : index
      %21 = vector.load %arg8[%c0_16, %c0_17] : memref<1x128xf32, #tpu.memory_space<vmem>>, vector<1x128xf32>
      %22 = vector.broadcast %21 : vector<1x128xf32> to vector<16x128xf32>
      %23 = arith.addf %20, %22 : vector<16x128xf32>
      %cst_18 = arith.constant 0.000000e+00 : f32
      %24 = vector.broadcast %cst_18 : f32 to vector<16x128xf32>
      %25 = arith.cmpf oge, %23, %24 : vector<16x128xf32>
      %cst_19 = arith.constant 0.00999999977 : f32
      %26 = vector.broadcast %cst_19 : f32 to vector<16x128xf32>
      %27 = arith.mulf %26, %23 : vector<16x128xf32>
      %28 = arith.select %25, %23, %27 : vector<16x128xi1>, vector<16x128xf32>
      %29 = arith.truncf %28 : vector<16x128xf32> to vector<16x128xbf16>
      %c0_20 = arith.constant 0 : index
      %c0_21 = arith.constant 0 : index
      %30 = vector.load %arg9[%c0_20, %c0_21] : memref<128x128xbf16, #tpu.memory_space<vmem>>, vector<128x128xbf16>
      %cst_22 = arith.constant dense<0.000000e+00> : vector<16x128xf32>
      %31 = tpu.matmul %29, %30, %cst_22 {dimension_numbers = #tpu.dot_dimension_numbers<[1], [0], [0], [1], [0, 0, 1, 1], [], []>} : vector<16x128xbf16>, vector<128x128xbf16>, vector<16x128xf32> -> vector<16x128xf32>
      %c0_23 = arith.constant 0 : index
      %c0_24 = arith.constant 0 : index
      %32 = vector.load %arg10[%c0_23, %c0_24] : memref<1x128xf32, #tpu.memory_space<vmem>>, vector<1x128xf32>
      %33 = vector.broadcast %32 : vector<1x128xf32> to vector<16x128xf32>
      %34 = arith.addf %31, %33 : vector<16x128xf32>
      %cst_25 = arith.constant 0.000000e+00 : f32
      %35 = vector.broadcast %cst_25 : f32 to vector<16x128xf32>
      %36 = arith.cmpf oge, %34, %35 : vector<16x128xf32>
      %cst_26 = arith.constant 0.00999999977 : f32
      %37 = vector.broadcast %cst_26 : f32 to vector<16x128xf32>
      %38 = arith.mulf %37, %34 : vector<16x128xf32>
      %39 = arith.select %36, %34, %38 : vector<16x128xi1>, vector<16x128xf32>
      %40 = arith.truncf %39 : vector<16x128xf32> to vector<16x128xbf16>
      %c0_27 = arith.constant 0 : index
      %c0_28 = arith.constant 0 : index
      %41 = vector.load %arg11[%c0_27, %c0_28] : memref<128x128xbf16, #tpu.memory_space<vmem>>, vector<128x128xbf16>
      %cst_29 = arith.constant dense<0.000000e+00> : vector<16x128xf32>
      %42 = tpu.matmul %40, %41, %cst_29 {dimension_numbers = #tpu.dot_dimension_numbers<[1], [0], [0], [1], [0, 0, 1, 1], [], []>} : vector<16x128xbf16>, vector<128x128xbf16>, vector<16x128xf32> -> vector<16x128xf32>
      %c0_30 = arith.constant 0 : index
      %c0_31 = arith.constant 0 : index
      %43 = vector.load %arg12[%c0_30, %c0_31] : memref<1x128xf32, #tpu.memory_space<vmem>>, vector<1x128xf32>
      %44 = vector.broadcast %43 : vector<1x128xf32> to vector<16x128xf32>
      %45 = arith.addf %42, %44 : vector<16x128xf32>
      %46 = tpu.iota {dimensions = array<i32: 1>} : vector<16x128xi32>
      %c2_i32_32 = arith.constant 2 : i32
      %47 = vector.broadcast %c2_i32_32 : i32 to vector<16x128xi32>
      %48 = arith.cmpi slt, %46, %47 : vector<16x128xi32>
      %cst_33 = arith.constant 0xFF800000 : f32
      %49 = vector.broadcast %cst_33 : f32 to vector<16x128xf32>
      %50 = arith.select %48, %45, %49 : vector<16x128xi1>, vector<16x128xf32>
      %cst_34 = arith.constant dense<0xFF800000> : vector<16xf32>
      %51 = vector.multi_reduction <maximumf>, %50, %cst_34 [1] : vector<16x128xf32> to vector<16xf32>
      %52 = vector.shape_cast %51 : vector<16xf32> to vector<16x1xf32>
      %53 = vector.broadcast %52 : vector<16x1xf32> to vector<16x128xf32>
      %54 = arith.subf %50, %53 : vector<16x128xf32>
      %55 = math.exp %54 : vector<16x128xf32>
      %cst_35 = arith.constant dense<0.000000e+00> : vector<16xf32>
      %56 = vector.multi_reduction <add>, %55, %cst_35 [1] : vector<16x128xf32> to vector<16xf32>
      %57 = vector.shape_cast %56 : vector<16xf32> to vector<16x1xf32>
      %58 = vector.broadcast %57 : vector<16x1xf32> to vector<16x128xf32>
      %59 = arith.divf %55, %58 : vector<16x128xf32>
      %c0_36 = arith.constant 0 : index
      %c0_37 = arith.constant 0 : index
      %60 = vector.load %arg13[%c0_36, %c0_37] : memref<16x128xf32, #tpu.memory_space<vmem>>, vector<16x128xf32>
      tpu.vector_store %arg13[%c0_36, %c0_37], %59 {strides = array<i32>} : memref<16x128xf32, #tpu.memory_space<vmem>>, vector<16x128xf32>,
    } else {
    }
    return
  }
  func.func @transform_0(%arg0: i32, %arg1: i32) -> (i32, i32) {
    %c0_i32 = arith.constant 0 : i32
    return %arg0, %arg1 : i32, i32
  }
  func.func @transform_1(%arg0: i32, %arg1: i32) -> (i32, i32) {
    %c0_i32 = arith.constant 0 : i32
    %c0_i32_0 = arith.constant 0 : i32
    return %arg0, %c0_i32 : i32, i32
  }
  func.func @transform_2(%arg0: i32, %arg1: i32) -> (i32, i32) {
    %c0_i32 = arith.constant 0 : i32
    %c0_i32_0 = arith.constant 0 : i32
    return %arg1, %c0_i32 : i32, i32
  }
  func.func @transform_3(%arg0: i32, %arg1: i32) -> (i32, i32) {
    %c0_i32 = arith.constant 0 : i32
    %c0_i32_0 = arith.constant 0 : i32
    %c0_i32_1 = arith.constant 0 : i32
    return %c0_i32, %c0_i32_0 : i32, i32
  }
  func.func @transform_4(%arg0: i32, %arg1: i32) -> (i32, i32) {
    %c0_i32 = arith.constant 0 : i32
    %c0_i32_0 = arith.constant 0 : i32
    %c0_i32_1 = arith.constant 0 : i32
    return %c0_i32, %c0_i32_0 : i32, i32
  }
  func.func @transform_5(%arg0: i32, %arg1: i32) -> (i32, i32) {
    %c0_i32 = arith.constant 0 : i32
    %c0_i32_0 = arith.constant 0 : i32
    %c0_i32_1 = arith.constant 0 : i32
    return %c0_i32, %c0_i32_0 : i32, i32
  }
  func.func @transform_6(%arg0: i32, %arg1: i32) -> (i32, i32) {
    %c0_i32 = arith.constant 0 : i32
    %c0_i32_0 = arith.constant 0 : i32
    %c0_i32_1 = arith.constant 0 : i32
    return %c0_i32, %c0_i32_0 : i32, i32
  }
  func.func @transform_7(%arg0: i32, %arg1: i32) -> (i32, i32) {
    %c0_i32 = arith.constant 0 : i32
    %c0_i32_0 = arith.constant 0 : i32
    %c0_i32_1 = arith.constant 0 : i32
    return %c0_i32, %c0_i32_0 : i32, i32
  }
  func.func @transform_8(%arg0: i32, %arg1: i32) -> (i32, i32) {
    %c0_i32 = arith.constant 0 : i32
    %c0_i32_0 = arith.constant 0 : i32
    %c0_i32_1 = arith.constant 0 : i32
    return %c0_i32, %c0_i32_0 : i32, i32
  }
  func.func @transform_9(%arg0: i32, %arg1: i32) -> (i32, i32) {
    %c0_i32 = arith.constant 0 : i32
    %c0_i32_0 = arith.constant 0 : i32
    %c0_i32_1 = arith.constant 0 : i32
    return %c0_i32, %c0_i32_0 : i32, i32
  }
  func.func @transform_10(%arg0: i32, %arg1: i32) -> (i32, i32) {
    %c0_i32 = arith.constant 0 : i32
    %c0_i32_0 = arith.constant 0 : i32
    %c0_i32_1 = arith.constant 0 : i32
    return %c0_i32, %c0_i32_0 : i32, i32
  }
  func.func @transform_11(%arg0: i32, %arg1: i32) -> (i32, i32) {
    %c0_i32 = arith.constant 0 : i32
    %c0_i32_0 = arith.constant 0 : i32
    return %arg0, %c0_i32 : i32, i32
  }
}

</mosaic_0001>

<bundles_post_ra>
// kernel: net_forward.1
= control target key start
LH: loop header
LB: loop body
LE: loop exit
PB: predicated region body
PF: predicated region fallthrough
CT: control target
= control target key end

     0   :  { %s1847_s17 = smov 0   ;;  %s1849_s18 = smov 0   ;;  %s2109_s0 = inlined_call_operand.vmem [shape: bf16[16,768], index: 0, kind: input, shape index: {}]   ;;  %s2110_s1 = inlined_call_operand.vmem [shape: f32[16,2], index: 1, kind: input, shape index: {}]   ;;  %s2111_s2 = inlined_call_operand.vmem [shape: bf16[768,256], index: 2, kind: input, shape index: {}]   ;;  %s2112_s3 = inlined_call_operand.vmem [shape: f32[2,256], index: 3, kind: input, shape index: {}]   ;;  %s2113_s4 = inlined_call_operand.vmem [shape: f32[1,256], index: 4, kind: input, shape index: {}]   ;;  %s2114_s5 = inlined_call_operand.vmem [shape: bf16[256,128], index: 5, kind: input, shape index: {}]   ;;  %s2115_s6 = inlined_call_operand.vmem [shape: f32[1,128], index: 6, kind: input, shape index: {}]   ;;  %s2116_s7 = inlined_call_operand.vmem [shape: bf16[128,128], index: 7, kind: input, shape index: {}]   ;;  %s2117_s8 = inlined_call_operand.vmem [shape: f32[1,128], index: 8, kind: input, shape index: {}]   ;;  %s2118_s9 = inlined_call_operand.vmem [shape: bf16[128,128], index: 9, kind: input, shape index: {}]   ;;  %s2119_s10 = inlined_call_operand.vmem [shape: f32[1,128], index: 10, kind: input, shape index: {}]   ;;  %s2120_s11 = inlined_call_operand.vmem [shape: f32[16,128], index: 11, kind: output, shape index: {}]  }
   0x1   :  { %s1851_s19 = smov 0   ;;  %s1853_s20 = smov 0  }
   0x2   :  { %s1855_s21 = smov 0  }
   0x3 LB: > { %s30_s22 = sadd.s32 1, %s1779_s20  ;;  %p49_p1 = scmp.ne.s32.totalorder %s1771_s18, %s1767_s17  ;;  %s1783_s21 = sphi %s1855_s21, %s21_s21   ;;  %s1779_s20 = sphi %s1853_s20, %s2124_s20   ;;  %s1775_s19 = sphi %s1851_s19, %s2123_s19   ;;  %s1771_s18 = sphi %s1849_s18, %s2122_s18   ;;  %s1767_s17 = sphi %s1847_s17, %s2121_s17  }
   0x4   : > { %p31_p0 = scmp.ge.s32.totalorder %s30_s22, 3  ;;  %p50_p2 = scmp.eq.s32.totalorder %s1783_s21, 0 }
   0x5   : > { %s42_s24 = sadd.s32 1, %s1771_s18  ;;  %p1342_p5 = scmp.ge.s32.totalorder %s1783_s21, 3 }
   0x6   : > { %s2126_s22 = smov (%p31_p0, %s30_s22), 0  ;;  %p51_p3 = por %p50_p2, %p49_p1 }
   0x7   : > { %s38_s23 = ssub.s32 %s1779_s20, %s2126_s22  ;;  %354 = sbr.rel (%p1342_p5) target bundleno = 18 (0x12), region = 52 }
   0x8   : > { %p40_p4 = scmp.eq.s32.totalorder %s38_s23, 0 }
   0xa   : > { %s1882_s25 = scalar_select %p40_p4, %s1771_s18, %s42_s24  }
   0xc   : > { %357 = sbr.rel (!%p51_p3) target bundleno = 18 (0x12), region = 56  ;;  %s359_s26 = sand.u32 (%p51_p3), 1, %s1771_s18  }
   0xd   : > { %s1621_s27 = sshll.u32 (%p51_p3), %s1779_s20, 3  ;;  %s1343_s28 = sshll.u32 (%p51_p3), %s359_s26, 4 }
   0xe   : > { %s367_s12 = scalar_lea.vmem (%p51_p3), %s2109_s0, %s1621_s27  ;;  %s361_s13 = scalar_lea.vmem (%p51_p3), [#allocation3], %s1343_s28 }
   0xf   : > { %v398_v0 = vld [vmem:[%s367_s12] sm:$0xff] (%p51_p3)  ;;  %v400_v1 = vld [vmem:[%s367_s12 + $0x18] sm:$0xff] (%p51_p3) }
  0x10   : > { %399 = vst [vmem:[%s361_s13] sm:$0xff] (%p51_p3), %v398_v0 }
  0x11   : > { %401 = vst [vmem:[%s361_s13 + $0x8] sm:$0xff] %v400_v1 }
  0x12 PF: > { %p1346_p6 = scmp.ge.s32.totalorder %s1783_s21, 1  ;;  %p416_p7 = scmp.lt.s32.totalorder %s1783_s21, 4 }
  0x14   : > { %p417_p8 = pnand %p1346_p6, %p416_p7 }
  0x15   : > { %s423_s14 = sand.u32 (!%p417_p8), 1, %s1767_s17   ;;  %s1348_s15 = sshll.u32 (!%p417_p8), %s1775_s19, 5 }
  0x16   : > { %420 = sbr.rel (%p417_p8) target bundleno = 1074 (0x432), region = 98  ;;  %s1347_s16 = sshll.u32 (!%p417_p8), %s423_s14, 4 }
  0x17   : > { %p482_p9 = scmp.lt.s32.totalorder (!%p417_p8), %s1348_s15, 95  ;;  %s1899_s28 = scalar_lea.vmem (!%p417_p8), [#allocation3], %s1347_s16 }
  0x18   : > { %p1351_p10 = scmp.ne.s32.totalorder (!%p417_p8), %s1775_s19, 0 }
  0x1b   : > { %s2128_s15 = smov (!%p482_p9, %s1348_s15), 95  ;;  %497 = sbr.rel (%p1351_p10) target bundleno = 165 (0xa5), region = 106 }
  0x1c   : > { %s1622_s23 = sshll.u32 %s2128_s15, 3 }
  0x1d   : > { %s1897_s27 = scalar_lea.vmem %s2111_s2, %s1622_s23 }
  0x20   : > { %v498_v2 = vld [vmem:[%s2110_s1] sm:$0xff]  ;;  %v1785_v3 = vmov 1   ;;  %v1786_v4 = vmov 0   ;;  %v499_v5 = vld [vmem:[%s2110_s1 + $0x8] sm:$0xff] }
  0x21   : > { %1732 = vset.pattern.permute.xlu1 %v1785_v3  ;;  %1731 = vset.pattern.permute.xlu0 %v1786_v4  ;;  %v500_v6 = vld [vmem:[%s2112_s3] sm:$0xf] }
  0x22   : > { %533 = vperm.xlu1 %1732, %v498_v2   ;;  %504 = vperm.xlu0 %1731, %v498_v2   ;;  %v540_v7 = vperm.slane %v500_v6, 1  ;;  %v541_v8 = vperm.slane %v500_v6, 3  ;;  %v513_v9 = vperm.slane %v500_v6, 0  ;;  %v514_v10 = vperm.slane %v500_v6, 2  ;;  %v501_v11 = vld [vmem:[%s2113_s4] sm:$0x3] }
  0x23   : > { %v524_v16 = vperm.slane %v501_v11, 0  ;;  %v525_v17 = vperm.slane %v501_v11, 1 }
  0x24   : > { %v544_v12 = vperm.slane %v540_v7, 1  ;;  %v545_v13 = vperm.slane %v541_v8, 1  ;;  %v517_v14 = vperm.slane %v513_v9, 0  ;;  %v518_v15 = vperm.slane %v514_v10, 0 }
  0x2a   : > { %537 = vperm.xlu1 %1732, %v499_v5   ;;  %509 = vperm.xlu0 %1731, %v499_v5  }
  0x32   : > { %1733 = vset.pattern.permute.xlu0 %v1785_v3 }
  0x94   : > { %v534_v18 = vpop.permute.xlu1 %533  ;;  %v505_v19 = vpop.permute.xlu0 %504 }
  0x95   : > { %v546_v20 = vmul.f32 %v544_v12, %v534_v18  ;;  %v547_v21 = vmul.f32 %v545_v13, %v534_v18  ;;  %v519_v22 = vmul.f32 %v517_v14, %v505_v19  ;;  %v520_v23 = vmul.f32 %v518_v15, %v505_v19 }
  0x97   : > { %v528_v24 = vadd.f32 %v524_v16, %v519_v22  ;;  %v529_v25 = vadd.f32 %v525_v17, %v520_v23 }
  0x99   : > { %v550_v26 = vadd.f32 %v546_v20, %v528_v24  ;;  %v551_v27 = vadd.f32 %v547_v21, %v529_v25 }
  0x9b   : > { %554 = vst [vmem:[#allocation2 + $0x10] sm:$0xff] %v550_v26 }
  0x9c   : > { %555 = vst [vmem:[#allocation2] sm:$0xff] %v551_v27  ;;  %v538_v28 = vpop.permute.xlu1 %537  ;;  %v510_v29 = vpop.permute.xlu0 %509 }
  0x9d   : > { %v521_v30 = vmul.f32 %v517_v14, %v510_v29  ;;  %v522_v31 = vmul.f32 %v518_v15, %v510_v29  ;;  %v548_v32 = vmul.f32 %v544_v12, %v538_v28  ;;  %v549_v33 = vmul.f32 %v545_v13, %v538_v28 }
  0x9f   : > { %v530_v34 = vadd.f32 %v524_v16, %v521_v30  ;;  %v531_v35 = vadd.f32 %v525_v17, %v522_v31 }
  0xa1   : > { %v552_v36 = vadd.f32 %v548_v32, %v530_v34  ;;  %v553_v37 = vadd.f32 %v549_v33, %v531_v35 }
  0xa3   : > { %556 = vst [vmem:[#allocation2 + $0x18] sm:$0xff] %v552_v36 }
  0xa4   : > { %557 = vst [vmem:[#allocation2 + $0x8] sm:$0xff] %v553_v37 }
  0xa5 PF: > { %v1418_v38 = vld [vmem:[%s1897_s27 + $0x70] sm:$0xf]  ;;  %v1640_v39 = vld [vmem:[%s1897_s27 + $0x74] sm:$0xf0]  ;;  %v1639_v43 = vld [vmem:[%s1897_s27 + $0x74] sm:$0xf] }
  0xa6   : > { %v1482_v40 = vld [vmem:[%s1897_s27 + $0xf0] sm:$0xf]  ;;  %v1419_v41 = vor.u32 %v1640_v39, %v1418_v38  ;;  %v1656_v42 = vld [vmem:[%s1897_s27 + $0xf4] sm:$0xf0]  ;;  %v1420_v44 = vld [vmem:[%s1897_s27 + $0x78] sm:$0xf0] }
  0xa7   : > { %v1483_v45 = vor.u32 %v1656_v42, %v1482_v40  ;;  %v1423_v46 = vor.u32 %v1639_v43, %v1420_v44  ;;  %v1655_v47 = vld [vmem:[%s1897_s27 + $0xf4] sm:$0xf]  ;;  %v1484_v48 = vld [vmem:[%s1897_s27 + $0xf8] sm:$0xf0]  ;;  %v1410_v49 = vld [vmem:[%s1897_s27 + $0x60] sm:$0xf] }
  0xa8   : > { %766 = vmatpush.bf16.msra.mxu0 %v1419_v41  ;;  %v1487_v50 = vor.u32 %v1655_v47, %v1484_v48  ;;  %v1638_v51 = vld [vmem:[%s1897_s27 + $0x64] sm:$0xf0]  ;;  %v1474_v52 = vld [vmem:[%s1897_s27 + $0xe0] sm:$0xf]  ;;  %v1637_v56 = vld [vmem:[%s1897_s27 + $0x64] sm:$0xf] }
  0xa9   : > { %v1654_v53 = vld [vmem:[%s1897_s27 + $0xe4] sm:$0xf0]  ;;  %780 = vmatpush.bf16.msra.mxu1 %v1483_v45  ;;  %794 = vmatpush.bf16.msra.mxu2 %v1423_v46  ;;  %v1411_v54 = vor.u32 %v1638_v51, %v1410_v49  ;;  %v1412_v57 = vld [vmem:[%s1897_s27 + $0x68] sm:$0xf0]  ;;  %v1653_v58 = vld [vmem:[%s1897_s27 + $0xe4] sm:$0xf] }
  0xaa   : > { %v1475_v55 = vor.u32 %v1654_v53, %v1474_v52  ;;  %808 = vmatpush.bf16.msra.mxu3 %v1487_v50  ;;  %v1415_v59 = vor.u32 %v1637_v56, %v1412_v57  ;;  %v1476_v60 = vld [vmem:[%s1897_s27 + $0xe8] sm:$0xf0]  ;;  %v1402_v61 = vld [vmem:[%s1897_s27 + $0x50] sm:$0xf]  ;;  %v1636_v62 = vld [vmem:[%s1897_s27 + $0x54] sm:$0xf0] }
  0xab   : > { %v1479_v63 = vor.u32 %v1653_v58, %v1476_v60  ;;  %v1466_v0 = vld [vmem:[%s1897_s27 + $0xd0] sm:$0xf]  ;;  %v1652_v1 = vld [vmem:[%s1897_s27 + $0xd4] sm:$0xf0]  ;;  %v1635_v2 = vld [vmem:[%s1897_s27 + $0x54] sm:$0xf]  ;;  %v1403_v3 = vor.u32 %v1636_v62, %v1402_v61 }
  0xac   : > { %767 = vmatpush.bf16.msra.mxu0 %v1411_v54  ;;  %v1404_v4 = vld [vmem:[%s1897_s27 + $0x58] sm:$0xf0]  ;;  %v1651_v5 = vld [vmem:[%s1897_s27 + $0xd4] sm:$0xf]  ;;  %v1467_v7 = vor.u32 %v1652_v1, %v1466_v0  ;;  %v1394_v9 = vld [vmem:[%s1897_s27 + $0x40] sm:$0xf] }
  0xad   : > { %v1468_v6 = vld [vmem:[%s1897_s27 + $0xd8] sm:$0xf0]  ;;  %781 = vmatpush.bf16.msra.mxu1 %v1475_v55  ;;  %795 = vmatpush.bf16.msra.mxu2 %v1415_v59  ;;  %v1407_v8 = vor.u32 %v1635_v2, %v1404_v4  ;;  %v1634_v10 = vld [vmem:[%s1897_s27 + $0x44] sm:$0xf0]  ;;  %v1458_v11 = vld [vmem:[%s1897_s27 + $0xc0] sm:$0xf] }
  0xae   : > { %809 = vmatpush.bf16.msra.mxu3 %v1479_v63  ;;  %v1471_v12 = vor.u32 %v1651_v5, %v1468_v6  ;;  %v1650_v13 = vld [vmem:[%s1897_s27 + $0xc4] sm:$0xf0]  ;;  %v1633_v14 = vld [vmem:[%s1897_s27 + $0x44] sm:$0xf]  ;;  %v1396_v15 = vld [vmem:[%s1897_s27 + $0x48] sm:$0xf0]  ;;  %v1395_v18 = vor.u32 %v1634_v10, %v1394_v9 }
  0xaf   : > { %v1649_v16 = vld [vmem:[%s1897_s27 + $0xc4] sm:$0xf]  ;;  %v1460_v17 = vld [vmem:[%s1897_s27 + $0xc8] sm:$0xf0]  ;;  %v1459_v19 = vor.u32 %v1650_v13, %v1458_v11  ;;  %v1399_v20 = vor.u32 %v1633_v14, %v1396_v15  ;;  %v1386_v21 = vld [vmem:[%s1897_s27 + $0x30] sm:$0xf] }
  0xb0   : > { %768 = vmatpush.bf16.msra.mxu0 %v1403_v3  ;;  %v1632_v22 = vld [vmem:[%s1897_s27 + $0x34] sm:$0xf0]  ;;  %v1450_v23 = vld [vmem:[%s1897_s27 + $0xb0] sm:$0xf]  ;;  %v1463_v24 = vor.u32 %v1649_v16, %v1460_v17  ;;  %v1631_v26 = vld [vmem:[%s1897_s27 + $0x34] sm:$0xf] }
  0xb1   : > { %782 = vmatpush.bf16.msra.mxu1 %v1467_v7  ;;  %796 = vmatpush.bf16.msra.mxu2 %v1407_v8  ;;  %v1648_v25 = vld [vmem:[%s1897_s27 + $0xb4] sm:$0xf0]  ;;  %v1388_v27 = vld [vmem:[%s1897_s27 + $0x38] sm:$0xf0]  ;;  %v1647_v28 = vld [vmem:[%s1897_s27 + $0xb4] sm:$0xf]  ;;  %v1387_v30 = vor.u32 %v1632_v22, %v1386_v21 }
  0xb2   : > { %810 = vmatpush.bf16.msra.mxu3 %v1471_v12  ;;  %v1452_v29 = vld [vmem:[%s1897_s27 + $0xb8] sm:$0xf0]  ;;  %v1451_v31 = vor.u32 %v1648_v25, %v1450_v23  ;;  %v1391_v32 = vor.u32 %v1631_v26, %v1388_v27  ;;  %v1378_v33 = vld [vmem:[%s1897_s27 + $0x20] sm:$0xf]  ;;  %v1630_v34 = vld [vmem:[%s1897_s27 + $0x24] sm:$0xf0] }
  0xb3   : > { %v1442_v35 = vld [vmem:[%s1897_s27 + $0xa0] sm:$0xf]  ;;  %v1455_v36 = vor.u32 %v1647_v28, %v1452_v29  ;;  %v1646_v37 = vld [vmem:[%s1897_s27 + $0xa4] sm:$0xf0]  ;;  %v1629_v38 = vld [vmem:[%s1897_s27 + $0x24] sm:$0xf]  ;;  %v1379_v42 = vor.u32 %v1630_v34, %v1378_v33 }
  0xb4   : > { %769 = vmatpush.bf16.msra.mxu0 %v1395_v18  ;;  %v1380_v39 = vld [vmem:[%s1897_s27 + $0x28] sm:$0xf0]  ;;  %v1645_v40 = vld [vmem:[%s1897_s27 + $0xa4] sm:$0xf]  ;;  %v1443_v43 = vor.u32 %v1646_v37, %v1442_v35  ;;  %v1370_v45 = vld [vmem:[%s1897_s27 + $0x10] sm:$0xf] }
  0xb5   : > { %783 = vmatpush.bf16.msra.mxu1 %v1459_v19  ;;  %797 = vmatpush.bf16.msra.mxu2 %v1399_v20  ;;  %v1444_v41 = vld [vmem:[%s1897_s27 + $0xa8] sm:$0xf0]  ;;  %v1383_v44 = vor.u32 %v1629_v38, %v1380_v39  ;;  %v1628_v46 = vld [vmem:[%s1897_s27 + $0x14] sm:$0xf0]  ;;  %v1434_v47 = vld [vmem:[%s1897_s27 + $0x90] sm:$0xf] }
  0xb6   : > { %811 = vmatpush.bf16.msra.mxu3 %v1463_v24  ;;  %v1447_v48 = vor.u32 %v1645_v40, %v1444_v41  ;;  %v1644_v49 = vld [vmem:[%s1897_s27 + $0x94] sm:$0xf0]  ;;  %v1627_v50 = vld [vmem:[%s1897_s27 + $0x14] sm:$0xf]  ;;  %v1372_v51 = vld [vmem:[%s1897_s27 + $0x18] sm:$0xf0]  ;;  %v1371_v54 = vor.u32 %v1628_v46, %v1370_v45 }
  0xb7   : > { %v1643_v52 = vld [vmem:[%s1897_s27 + $0x94] sm:$0xf]  ;;  %v1436_v53 = vld [vmem:[%s1897_s27 + $0x98] sm:$0xf0]  ;;  %v1435_v55 = vor.u32 %v1644_v49, %v1434_v47  ;;  %v1375_v56 = vor.u32 %v1627_v50, %v1372_v51  ;;  %v1362_v57 = vld [vmem:[%s1897_s27] sm:$0xf] }
  0xb8   : > { %770 = vmatpush.bf16.msra.mxu0 %v1387_v30  ;;  %v1626_v58 = vld [vmem:[%s1897_s27 + $0x4] sm:$0xf0]  ;;  %v1426_v59 = vld [vmem:[%s1897_s27 + $0x80] sm:$0xf]  ;;  %v1439_v60 = vor.u32 %v1643_v52, %v1436_v53  ;;  %v1625_v62 = vld [vmem:[%s1897_s27 + $0x4] sm:$0xf] }
  0xb9   : > { %784 = vmatpush.bf16.msra.mxu1 %v1451_v31  ;;  %798 = vmatpush.bf16.msra.mxu2 %v1391_v32  ;;  %v1642_v61 = vld [vmem:[%s1897_s27 + $0x84] sm:$0xf0]  ;;  %v1364_v63 = vld [vmem:[%s1897_s27 + $0x8] sm:$0xf0]  ;;  %v1641_v0 = vld [vmem:[%s1897_s27 + $0x84] sm:$0xf]  ;;  %v1363_v2 = vor.u32 %v1626_v58, %v1362_v57 }
  0xba   : > { %812 = vmatpush.bf16.msra.mxu3 %v1455_v36  ;;  %v1428_v1 = vld [vmem:[%s1897_s27 + $0x88] sm:$0xf0]  ;;  %v1354_v3 = vld [vmem:[%s1899_s28] sm:$0xf]  ;;  %v1624_v4 = vld [vmem:[%s1899_s28 + $0x4] sm:$0xf0]  ;;  %v1427_v5 = vor.u32 %v1642_v61, %v1426_v59  ;;  %v1367_v6 = vor.u32 %v1625_v62, %v1364_v63 }
  0xbb   : > { %v1623_v7 = vld [vmem:[%s1899_s28 + $0x4] sm:$0xf]  ;;  %v1356_v8 = vld [vmem:[%s1899_s28 + $0x8] sm:$0xf0]  ;;  %v1431_v9 = vor.u32 %v1641_v0, %v1428_v1  ;;  %v1355_v10 = vor.u32 %v1624_v4, %v1354_v3  ;;  %p1488_p11 = scmp.ne.s32.totalorder %s1775_s19, 2 }
  0xbc   : > { %771 = vmatpush.bf16.msra.mxu0 %v1379_v42  ;;  %v1359_v11 = vor.u32 %v1623_v7, %v1356_v8  ;;  %v558_v13 = vld [vmem:[#allocation2 + $0x10] sm:$0xff]  ;;  %v559_v18 = vld [vmem:[#allocation2] sm:$0xff]  ;;  %v560_v22 = vld [vmem:[#allocation2 + $0x18] sm:$0xff] }
  0xbd   : > { %785 = vmatpush.bf16.msra.mxu1 %v1443_v43  ;;  %799 = vmatpush.bf16.msra.mxu2 %v1383_v44  ;;  %v561_v28 = vld [vmem:[#allocation2 + $0x8] sm:$0xff] }
  0xbe   : > { %813 = vmatpush.bf16.msra.mxu3 %v1447_v48 }
  0xc0   : > { %772 = vmatpush.bf16.msra.mxu0 %v1371_v54 }
  0xc1   : > { %786 = vmatpush.bf16.msra.mxu1 %v1435_v55  ;;  %800 = vmatpush.bf16.msra.mxu2 %v1375_v56 }
  0xc2   : > { %814 = vmatpush.bf16.msra.mxu3 %v1439_v60 }
  0xc4   : > { %773 = vmatpush.bf16.msra.mxu0 %v1363_v2 }
  0xc5   : > { %787 = vmatpush.bf16.msra.mxu1 %v1427_v5  ;;  %801 = vmatpush.bf16.msra.mxu2 %v1367_v6 }
  0xc6   : > { %815 = vmatpush.bf16.msra.mxu3 %v1431_v9 }
  0xc7   : > { %774 = vmatmul.bf16.vlgmr.msra.gmra.mxu0 %v1355_v10 }
  0xc8   : > { %788 = vmatmul.bf16.vlgmr.msra.gmra.mxu1 %v1359_v11  ;;  %802 = vmatmul.bf16.vlgmr.msra.gmra.mxu2 %v1355_v10 }
  0xc9   : > { %816 = vmatmul.bf16.vlgmr.msra.gmra.mxu3 %v1359_v11 }
 0x144   : > { %v775_v12 = vpop.f32.mrf.mxu0 }
 0x145   : > { %v789_v14 = vpop.f32.mrf.mxu1 }
 0x146   : > { %v790_v15 = vadd.f32 %v789_v14, %v775_v12 }
 0x148   : > { %v822_v16 = vadd.f32 %v790_v15, %v558_v13 }
 0x14a   : > { %826 = vst [vmem:[#allocation2 + $0x10] sm:$0xff] %v822_v16 }
 0x14b   : > { %v803_v17 = vpop.f32.mrf.mxu2 }
 0x14c   : > { %v817_v19 = vpop.f32.mrf.mxu3  ;;  %v777_v20 = vpop.f32.mrf.mxu0 }
 0x14d   : > { %v818_v21 = vadd.f32 %v817_v19, %v803_v17  ;;  %v791_v23 = vpop.f32.mrf.mxu1 }
 0x14e   : > { %v792_v24 = vadd.f32 %v791_v23, %v777_v20 }
 0x14f   : > { %v823_v25 = vadd.f32 %v818_v21, %v559_v18 }
 0x150   : > { %v824_v26 = vadd.f32 %v792_v24, %v560_v22 }
 0x151   : > { %827 = vst [vmem:[#allocation2] sm:$0xff] %v823_v25 }
 0x152   : > { %828 = vst [vmem:[#allocation2 + $0x18] sm:$0xff] %v824_v26 }
 0x153   : > { %v805_v27 = vpop.f32.mrf.mxu2 }
 0x154   : > { %v819_v29 = vpop.f32.mrf.mxu3 }
 0x155   : > { %v820_v30 = vadd.f32 %v819_v29, %v805_v27  ;;  %833 = sbr.rel (%p1488_p11) target bundleno = 1074 (0x432), region = 110 }
 0x157   : > { %v825_v31 = vadd.f32 %v820_v30, %v561_v28 }
 0x159   : > { %829 = vst [vmem:[#allocation2 + $0x8] sm:$0xff] %v825_v31 }
 0x15a   : > { %v1664_v32 = vld [vmem:[%s2114_s5 + $0x38] sm:$0xff]  ;;  %v1663_v34 = vld [vmem:[%s2114_s5 + $0x30] sm:$0xff]  ;;  %v1662_v36 = vld [vmem:[%s2114_s5 + $0x28] sm:$0xff] }
 0x15b   : > { %v1672_v33 = vld [vmem:[%s2114_s5 + $0x78] sm:$0xff]  ;;  %984 = vmatpush.bf16.msra.mxu0 %v1664_v32  ;;  %v1671_v35 = vld [vmem:[%s2114_s5 + $0x70] sm:$0xff]  ;;  %v1670_v37 = vld [vmem:[%s2114_s5 + $0x68] sm:$0xff] }
 0x15c   : > { %998 = vmatpush.bf16.msra.mxu1 %v1672_v33  ;;  %v1680_v38 = vld [vmem:[%s2116_s7 + $0x38] sm:$0xff]  ;;  %v1661_v39 = vld [vmem:[%s2114_s5 + $0x20] sm:$0xff]  ;;  %v1679_v40 = vld [vmem:[%s2116_s7 + $0x30] sm:$0xff] }
 0x15d   : > { %1087 = vmatpush.bf16.msra.mxu2 %v1680_v38  ;;  %v1669_v41 = vld [vmem:[%s2114_s5 + $0x60] sm:$0xff]  ;;  %v1678_v42 = vld [vmem:[%s2116_s7 + $0x28] sm:$0xff]  ;;  %v1660_v43 = vld [vmem:[%s2114_s5 + $0x18] sm:$0xff]  ;;  %v1190_v38 = vlaneseq }
 0x15e   : > { %v1668_v44 = vld [vmem:[%s2114_s5 + $0x58] sm:$0xff]  ;;  %v1677_v45 = vld [vmem:[%s2116_s7 + $0x20] sm:$0xff]  ;;  %v1659_v46 = vld [vmem:[%s2114_s5 + $0x10] sm:$0xff] }
 0x15f   : > { %985 = vmatpush.bf16.msra.mxu0 %v1663_v34  ;;  %v1667_v47 = vld [vmem:[%s2114_s5 + $0x50] sm:$0xff]  ;;  %v836_v49 = vld [vmem:[#allocation2 + $0x18] sm:$0xff]  ;;  %v835_v50 = vld [vmem:[#allocation2] sm:$0xff] }
 0x160   : > { %999 = vmatpush.bf16.msra.mxu1 %v1671_v35  ;;  %v834_v48 = vld [vmem:[#allocation2 + $0x10] sm:$0xff]  ;;  %v837_v51 = vld [vmem:[#allocation2 + $0x8] sm:$0xff]  ;;  %v844_v55 = vmul.f32 0.01, %v836_v49  ;;  %v843_v56 = vmul.f32 0.01, %v835_v50 }
 0x161   : > { %1088 = vmatpush.bf16.msra.mxu2 %v1679_v40  ;;  %v1658_v52 = vld [vmem:[%s2114_s5 + $0x8] sm:$0xff]  ;;  %vm838_vm0 = vcmp.ge.f32.partialorder %v834_v48, 0.0  ;;  %v842_v54 = vmul.f32 0.01, %v834_v48  ;;  %v845_v57 = vmul.f32 0.01, %v837_v51 }
 0x162   : > { %v1666_v53 = vld [vmem:[%s2114_s5 + $0x48] sm:$0xff]  ;;  %vm840_vm1 = vcmp.ge.f32.partialorder %v836_v49, 0.0  ;;  %vm839_vm2 = vcmp.ge.f32.partialorder %v835_v50, 0.0  ;;  %vm841_vm3 = vcmp.ge.f32.partialorder %v837_v51, 0.0  ;;  %v1657_v59 = vld [vmem:[%s2114_s5] sm:$0xff]  ;;  %v1676_v2 = vld [vmem:[%s2116_s7 + $0x18] sm:$0xff] }
 0x163   : > { %986 = vmatpush.bf16.msra.mxu0 %v1662_v36  ;;  %v846_v58 = vsel %vm838_vm0, %v834_v48, %v842_v54  ;;  %v1665_v60 = vld [vmem:[%s2114_s5 + $0x40] sm:$0xff]  ;;  %v848_v61 = vsel %vm840_vm1, %v836_v49, %v844_v55  ;;  %v847_v62 = vsel %vm839_vm2, %v835_v50, %v843_v56  ;;  %v849_v63 = vsel %vm841_vm3, %v837_v51, %v845_v57  ;;  %v1675_v3 = vld [vmem:[%s2116_s7 + $0x10] sm:$0xff]  ;;  %v1674_v4 = vld [vmem:[%s2116_s7 + $0x8] sm:$0xff] }
 0x164   : > { %1000 = vmatpush.bf16.msra.mxu1 %v1670_v37  ;;  %v850_v0 = vpack.c.bf16 %v848_v61, %v846_v58  ;;  %v851_v1 = vpack.c.bf16 %v849_v63, %v847_v62  ;;  %v1673_v5 = vld [vmem:[%s2116_s7] sm:$0xff]  ;;  %v1688_v6 = vld [vmem:[%s2118_s9 + $0x38] sm:$0xff]  ;;  %v1687_v7 = vld [vmem:[%s2118_s9 + $0x30] sm:$0xff] }
 0x165   : > { %1089 = vmatpush.bf16.msra.mxu2 %v1678_v42  ;;  %1176 = vmatpush.bf16.msra.mxu3 %v1688_v6  ;;  %v1686_v8 = vld [vmem:[%s2118_s9 + $0x28] sm:$0xff]  ;;  %v1685_v9 = vld [vmem:[%s2118_s9 + $0x20] sm:$0xff]  ;;  %v1684_v24 = vld [vmem:[%s2118_s9 + $0x18] sm:$0xff] }
 0x166   : > { %v1734_v10 = vld [vmem:[%s2115_s6] ss:$0 sm:$0xff]  ;;  %v1683_v25 = vld [vmem:[%s2118_s9 + $0x10] sm:$0xff]  ;;  %v1682_v26 = vld [vmem:[%s2118_s9 + $0x8] sm:$0xff] }
 0x167   : > { %987 = vmatpush.bf16.msra.mxu0 %v1661_v39  ;;  %v1681_v27 = vld [vmem:[%s2118_s9] sm:$0xff]  ;;  %v1191_v39 = vand.u32 127, %v1190_v38 }
 0x168   : > { %1001 = vmatpush.bf16.msra.mxu1 %v1669_v41  ;;  %v1735_v29 = vld [vmem:[%s2117_s8] ss:$0 sm:$0xff] }
 0x169   : > { %1090 = vmatpush.bf16.msra.mxu2 %v1677_v45  ;;  %1177 = vmatpush.bf16.msra.mxu3 %v1687_v7  ;;  %v1736_v40 = vld [vmem:[%s2119_s10] ss:$0 sm:$0xff]  ;;  %vm1192_vm8 = vcmp.lt.s32.totalorder %v1191_v39, 2 }
 0x16b   : > { %988 = vmatpush.bf16.msra.mxu0 %v1660_v43 }
 0x16c   : > { %1002 = vmatpush.bf16.msra.mxu1 %v1668_v44 }
 0x16d   : > { %1091 = vmatpush.bf16.msra.mxu2 %v1676_v2  ;;  %1178 = vmatpush.bf16.msra.mxu3 %v1686_v8 }
 0x16f   : > { %989 = vmatpush.bf16.msra.mxu0 %v1659_v46 }
 0x170   : > { %1003 = vmatpush.bf16.msra.mxu1 %v1667_v47 }
 0x171   : > { %1092 = vmatpush.bf16.msra.mxu2 %v1675_v3  ;;  %1179 = vmatpush.bf16.msra.mxu3 %v1685_v9 }
 0x173   : > { %990 = vmatpush.bf16.msra.mxu0 %v1658_v52 }
 0x174   : > { %1004 = vmatpush.bf16.msra.mxu1 %v1666_v53 }
 0x175   : > { %1093 = vmatpush.bf16.msra.mxu2 %v1674_v4  ;;  %1180 = vmatpush.bf16.msra.mxu3 %v1684_v24 }
 0x177   : > { %991 = vmatpush.bf16.msra.mxu0 %v1657_v59 }
 0x178   : > { %1005 = vmatpush.bf16.msra.mxu1 %v1665_v60 }
 0x179   : > { %1094 = vmatpush.bf16.msra.mxu2 %v1673_v5  ;;  %1181 = vmatpush.bf16.msra.mxu3 %v1683_v25 }
 0x17a   : > { %992 = vmatmul.bf16.vlgmr.msra.gmra.mxu0 %v850_v0 }
 0x17b   : > { %1006 = vmatmul.bf16.vlgmr.msra.gmra.mxu1 %v851_v1 }
 0x17d   : > { %1182 = vmatpush.bf16.msra.mxu3 %v1682_v26 }
 0x181   : > { %1183 = vmatpush.bf16.msra.mxu3 %v1681_v27 }
 0x1f7   : > { %v993_v11 = vpop.f32.mrf.mxu0 }
 0x1f8   : > { %v1007_v12 = vpop.f32.mrf.mxu1  ;;  %v994_v13 = vadd.f32 %v1734_v10, %v993_v11 }
 0x1fa   : > { %v1008_v14 = vadd.f32 %v1007_v12, %v994_v13 }
 0x1fc   : > { %v1014_v18 = vmul.f32 0.01, %v1008_v14  ;;  %vm1012_vm4 = vcmp.ge.f32.partialorder %v1008_v14, 0.0 }
 0x1fe   : > { %v1016_v21 = vsel %vm1012_vm4, %v1008_v14, %v1014_v18 }
 0x1ff   : > { %v995_v15 = vpop.f32.mrf.mxu0 }
 0x200   : > { %v996_v16 = vadd.f32 %v1734_v10, %v995_v15  ;;  %v1009_v17 = vpop.f32.mrf.mxu1 }
 0x202   : > { %v1010_v19 = vadd.f32 %v1009_v17, %v996_v16 }
 0x204   : > { %v1015_v20 = vmul.f32 0.01, %v1010_v19  ;;  %vm1013_vm5 = vcmp.ge.f32.partialorder %v1010_v19, 0.0 }
 0x206   : > { %v1017_v22 = vsel %vm1013_vm5, %v1010_v19, %v1015_v20 }
 0x207   : > { %v1018_v23 = vpack.c.bf16 %v1017_v22, %v1016_v21 }
 0x209   : > { %1095 = vmatmul.bf16.vlgmr.msra.gmra.mxu2 %v1018_v23 }
 0x28c   : > { %v1096_v28 = vpop.f32.mrf.mxu2 }
 0x28d   : > { %v1097_v30 = vadd.f32 %v1735_v29, %v1096_v28 }
 0x28f   : > { %v1103_v32 = vmul.f32 0.01, %v1097_v30  ;;  %vm1101_vm6 = vcmp.ge.f32.partialorder %v1097_v30, 0.0 }
 0x291   : > { %v1105_v35 = vsel %vm1101_vm6, %v1097_v30, %v1103_v32 }
 0x294   : > { %v1098_v31 = vpop.f32.mrf.mxu2 }
 0x295   : > { %v1099_v33 = vadd.f32 %v1735_v29, %v1098_v31 }
 0x297   : > { %v1104_v34 = vmul.f32 0.01, %v1099_v33  ;;  %vm1102_vm7 = vcmp.ge.f32.partialorder %v1099_v33, 0.0 }
 0x299   : > { %v1106_v36 = vsel %vm1102_vm7, %v1099_v33, %v1104_v34 }
 0x29a   : > { %v1107_v37 = vpack.c.bf16 %v1106_v36, %v1105_v35 }
 0x29c   : > { %1184 = vmatmul.bf16.vlgmr.msra.gmra.mxu3 %v1107_v37 }
 0x31f   : > { %v1185_v41 = vpop.f32.mrf.mxu3 }
 0x320   : > { %v1186_v42 = vadd.f32 %v1736_v40, %v1185_v41 }
 0x322   : > { %v1193_v43 = vsel %vm1192_vm8, %v1186_v42, -inf }
 0x323   : > { %1195 = vmax.xlane.f32.xlu0 %v1193_v43 }
 0x327   : > { %v1187_v44 = vpop.f32.mrf.mxu3 }
 0x328   : > { %v1188_v45 = vadd.f32 %v1736_v40, %v1187_v44 }
 0x32a   : > { %v1194_v46 = vsel %vm1192_vm8, %v1188_v45, -inf }
 0x32b   : > { %1197 = vmax.xlane.f32.xlu0 %v1194_v46 }
 0x396   : > { %v1196_v47 = vpop.xlane.xlu0 %1195 }
 0x397   : > { %v1199_v48 = vsub.f32 %v1193_v43, %v1196_v47 }
 0x399   : > { %v1201_v49 = vmul.f32 1.442695, %v1199_v48 }
 0x39b   : > { %1737 = vpow2.f32 %v1201_v49 }
 0x39e   : > { %v1198_v50 = vpop.xlane.xlu0 %1197 }
 0x39f   : > { %v1200_v51 = vsub.f32 %v1194_v46, %v1198_v50 }
 0x3a1   : > { %v1738_v52 = vpop.eup %1737  ;;  %v1203_v53 = vmul.f32 1.442695, %v1200_v51 }
 0x3a2   : > { %1205 = vadd.xlane.f32.xlu1 %v1738_v52 }
 0x3a3   : > { %1739 = vpow2.f32 %v1203_v53 }
 0x3a9   : > { %v1740_v54 = vpop.eup %1739 }
 0x3aa   : > { %1207 = vadd.xlane.f32.xlu1 %v1740_v54 }
 0x415   : > { %v1206_v55 = vpop.xlane.xlu1 %1205 }
 0x416   : > { %1741 = vrcp.f32 %v1206_v55  ;;  %v1220_v60 = vand.u32 2147483648, %v1206_v55  ;;  %v1218_v62 = vand.u32 2147483647, %v1206_v55  ;;  %vm1214_vm10 = vweird.f32 %v1206_v55 }
 0x418   : > { %v1221_v1 = vor.u32 1.1754944e-38, %v1220_v60  ;;  %vm1219_vm12 = vcmp.eq.f32.partialorder %v1218_v62, 8.507059e+37 }
 0x41c   : > { %v1742_v56 = vpop.eup %1741 }
 0x41d   : > { %v1210_v57 = vmul.f32 %v1742_v56, %v1206_v55  ;;  %v1208_v58 = vpop.xlane.xlu1 %1207  ;;  %vm1215_vm9 = vweird.f32 %v1742_v56 }
 0x41e   : > { %1743 = vrcp.f32 %v1208_v58  ;;  %vm1216_vm11 = vmor %vm1214_vm10, %vm1215_vm9  ;;  %v1235_v7 = vand.u32 2147483648, %v1208_v58  ;;  %v1233_v9 = vand.u32 2147483647, %v1208_v58  ;;  %vm1229_vm14 = vweird.f32 %v1208_v58 }
 0x41f   : > { %v1211_v59 = vsub.f32 1.0, %v1210_v57 }
 0x420   : > { %v1236_v11 = vor.u32 1.1754944e-38, %v1235_v7  ;;  %vm1234_vm0 = vcmp.eq.f32.partialorder %v1233_v9, 8.507059e+37 }
 0x421   : > { %v1212_v61 = vmul.f32 %v1742_v56, %v1211_v59 }
 0x423   : > { %v1213_v63 = vadd.f32 %v1742_v56, %v1212_v61 }
 0x424   : > { %v1744_v0 = vpop.eup %1743 }
 0x425   : > { %v1217_v2 = vsel %vm1216_vm11, %v1742_v56, %v1213_v63  ;;  %v1225_v3 = vmul.f32 %v1744_v0, %v1208_v58  ;;  %vm1230_vm13 = vweird.f32 %v1744_v0 }
 0x426   : > { %v1222_v4 = vsel %vm1219_vm12, %v1221_v1, %v1217_v2  ;;  %vm1231_vm15 = vmor %vm1229_vm14, %vm1230_vm13 }
 0x427   : > { %v1223_v5 = vmul.f32 %v1738_v52, %v1222_v4  ;;  %v1226_v6 = vsub.f32 1.0, %v1225_v3 }
 0x429   : > { %1239 = vst [vmem:[%s2120_s11] sm:$0xff] %v1223_v5  ;;  %v1227_v8 = vmul.f32 %v1744_v0, %v1226_v6 }
 0x42b   : > { %v1228_v10 = vadd.f32 %v1744_v0, %v1227_v8 }
 0x42d   : > { %v1232_v12 = vsel %vm1231_vm15, %v1744_v0, %v1228_v10 }
 0x42e   : > { %v1237_v13 = vsel %vm1234_vm0, %v1236_v11, %v1232_v12 }
 0x42f   : > { %v1238_v14 = vmul.f32 %v1740_v54, %v1237_v13 }
 0x431   : > { %1240 = vst [vmem:[%s2120_s11 + $0x8] sm:$0xff] %v1238_v14 }
 0x432 PF: > { %s21_s21 = sadd.s32 1, %s1783_s21   ;;  %s2121_s17 = smov %s1771_s18 }
 0x433   : > { %p18_p12 = scmp.ge.s32.totalorder %s21_s21, 5   ;;  %s2122_s18 = smov %s1882_s25 }
 0x434   : > { %s2123_s19 = smov %s1779_s20  ;;  %s2124_s20 = smov %s2126_s22 }
 0x435   :  { %20 = sbr.rel (!%p18_p12) target bundleno = 3 (0x3), region = 151 }

</bundles_post_ra>
